<compile_context>
chip_gen: v7x
topology: tpu7x:2x2x1
jax: 0.10.0
libtpu: 0.0.40
codegen_flags: <defaults>
</compile_context>

<pallas_src>
import functools

import jax
import jax.numpy as jnp
from jax.experimental import pallas as pl
from jax.experimental.pallas import tpu as pltpu


def _round_up(x, m):
    return ((x + m - 1) // m) * m


# ---------------------------------------------------------------------------
# Kernels
# ---------------------------------------------------------------------------

def _single_k_kernel(x_ref, w_ref, b_ref, o_ref):
    # x_ref: (tm, D_pad) bf16   w_ref: (D_pad, tn) bf16
    # b_ref: (1, tn)     f32    o_ref: (tm, tn)    f32
    o_ref[...] = (
        jnp.dot(x_ref[...], w_ref[...], preferred_element_type=jnp.float32)
        + b_ref[...]
    ).astype(o_ref.dtype)


def _multi_k_kernel(x_ref, w_ref, b_ref, o_ref, acc_ref):
    # Same matmul with a K grid axis; accumulator is seeded with the bias at
    # k == 0 so there is no extra epilogue add.
    k = pl.program_id(2)

    @pl.when(k == 0)
    def _():
        acc_ref[...] = jnp.broadcast_to(b_ref[...], acc_ref.shape)

    acc_ref[...] += jnp.dot(
        x_ref[...], w_ref[...], preferred_element_type=jnp.float32
    )

    @pl.when(k == pl.num_programs(2) - 1)
    def _():
        o_ref[...] = acc_ref[...].astype(o_ref.dtype)


# ---------------------------------------------------------------------------
# Static tile selection (shape-only, no device work)
# ---------------------------------------------------------------------------

def _pick_nk_tiles(D, N):
    # tn: multiple of 256 to match the v6e/v7x 2x256^2 MXU (fine on v5e too).
    tn = 512 if N >= 512 else 256
    N_pad = _round_up(N, tn)
    # Collapse K into a single tile when D fits comfortably in VMEM (typical
    # eval feature dims); otherwise stream K in 1024-wide chunks.
    if D <= 2048:
        tk = _round_up(D, 128)
        D_pad = tk
        single_k = True
    else:
        tk = 1024
        D_pad = _round_up(D, tk)
        single_k = False
    return tn, N_pad, tk, D_pad, single_k


def _pick_m_tile(B, N_pad, tn):
    # tm as large as possible; bf16 packs 16 sublanes per vreg, so keep tm a
    # multiple of 16.
    tm = min(512, _round_up(B, 16))
    B_pad = _round_up(B, tm)
    # Keep >= 2 parallel (i, j) blocks where possible so v7x's second
    # TensorCore has work (harmless on v5e/v6e).
    if (B_pad // tm) * (N_pad // tn) < 2 and tm % 32 == 0 and B > tm // 2:
        tm //= 2
        B_pad = _round_up(B, tm)
    return tm, B_pad


# ---------------------------------------------------------------------------
# Forward
# ---------------------------------------------------------------------------

@functools.partial(
    jax.jit, static_argnames=("names", "C", "tm", "tn", "tk", "single_k")
)
def _merged_forward(x, w_pad, b_pad, *, names, C, tm, tn, tk, single_k):
    B, D = x.shape
    D_pad, N_pad = w_pad.shape
    N = len(names) * C
    B_pad = _round_up(B, tm)

    # Only the activations are prepped per call (weights were prepped once).
    x_bf = jnp.pad(x.astype(jnp.bfloat16), ((0, B_pad - B), (0, D_pad - D)))

    if single_k:
        out = pl.pallas_call(
            _single_k_kernel,
            out_shape=jax.ShapeDtypeStruct((B_pad, N_pad), jnp.float32),
            grid_spec=pltpu.PrefetchScalarGridSpec(
                num_scalar_prefetch=0,
                grid=(B_pad // tm, N_pad // tn),
                in_specs=[
                    pl.BlockSpec((tm, D_pad), lambda i, j: (i, 0)),  # features
                    pl.BlockSpec((D_pad, tn), lambda i, j: (0, j)),  # merged W
                    pl.BlockSpec((1, tn), lambda i, j: (0, j)),      # merged b
                ],
                out_specs=pl.BlockSpec((tm, tn), lambda i, j: (i, j)),
            ),
            compiler_params=pltpu.CompilerParams(
                dimension_semantics=("parallel", "parallel"),
            ),
        )(x_bf, w_pad, b_pad)
    else:
        out = pl.pallas_call(
            _multi_k_kernel,
            out_shape=jax.ShapeDtypeStruct((B_pad, N_pad), jnp.float32),
            grid_spec=pltpu.PrefetchScalarGridSpec(
                num_scalar_prefetch=0,
                grid=(B_pad // tm, N_pad // tn, D_pad // tk),
                in_specs=[
                    pl.BlockSpec((tm, tk), lambda i, j, k: (i, k)),
                    pl.BlockSpec((tk, tn), lambda i, j, k: (k, j)),
                    pl.BlockSpec((1, tn), lambda i, j, k: (0, j)),
                ],
                out_specs=pl.BlockSpec((tm, tn), lambda i, j, k: (i, j)),
                scratch_shapes=[pltpu.VMEM((tm, tn), jnp.float32)],
            ),
            compiler_params=pltpu.CompilerParams(
                dimension_semantics=("parallel", "parallel", "arbitrary"),
            ),
        )(x_bf, w_pad, b_pad)

    # Strip padding and split into per-head logits inside the same jit so XLA
    # fuses the output copies into one pass.
    out = out[:B, :N]
    return {name: out[:, i * C:(i + 1) * C] for i, name in enumerate(names)}


class AllClassifiersPallas:
    """Pallas equivalent of AllClassifiers: a dict of Linear heads on one input.

    Weight preprocessing (merge heads, transpose, bf16 cast, pad) is done ONCE
    at construction and reused across every forward call.
    """

    def __init__(self, stacked_w, stacked_b, names):
        H, C, D = stacked_w.shape
        assert stacked_b.shape == (H, C)
        assert len(names) == H
        self.names = tuple(names)
        self.C = int(C)
        self.D = int(D)
        N = H * C

        tn, N_pad, tk, D_pad, single_k = _pick_nk_tiles(D, N)
        self.tn, self.tk, self.single_k = tn, tk, single_k

        # One-time weight/bias prep (hoisted out of the forward path).
        w_all = jnp.transpose(stacked_w.reshape(N, D)).astype(jnp.bfloat16)
        self.w_pad = jax.block_until_ready(
            jnp.pad(w_all, ((0, D_pad - D), (0, N_pad - N))))
        b_all = stacked_b.reshape(1, N).astype(jnp.float32)
        self.b_pad = jax.block_until_ready(
            jnp.pad(b_all, ((0, 0), (0, N_pad - N))))

    def __len__(self):
        return len(self.names)

    def __call__(self, x):
        B, D = x.shape
        assert D == self.D
        _, N_pad = self.w_pad.shape
        tm, _ = _pick_m_tile(B, N_pad, self.tn)
        return _merged_forward(
            x, self.w_pad, self.b_pad,
            names=self.names, C=self.C,
            tm=tm, tn=self.tn, tk=self.tk, single_k=self.single_k,
        )


# ---------------------------------------------------------------------------
# References
# ---------------------------------------------------------------------------

def reference_forward(x, stacked_w, stacked_b, names):
    """Plain-JAX f32 reference matching PyTorch nn.Linear semantics."""
    return {
        name: x @ stacked_w[i].T + stacked_b[i]
        for i, name in enumerate(names)
    }


def reference_forward_bf16(x, stacked_w, stacked_b, names):
    """Reference mirroring the kernel's bf16-operand / f32-accum numerics."""
    xb = x.astype(jnp.bfloat16).astype(jnp.float32)
    wb = stacked_w.astype(jnp.bfloat16).astype(jnp.float32)
    return {
        name: xb @ wb[i].T + stacked_b[i]
        for i, name in enumerate(names)
    }


if __name__ == "__main__":
    # Small deterministic setup: 3 classifier heads, batch=8, dim=32, classes=16.
    B, D, C = 8, 32, 16
    names = ["classifier_lr_0.001", "classifier_lr_0.01", "classifier_lr_0.1"]
    H = len(names)

    key = jax.random.PRNGKey(0)
    kx, kw, kb = jax.random.split(key, 3)
    x = jax.random.normal(kx, (B, D), dtype=jnp.float32)
    # Deterministic "trunc_normal-like" init (std=0.01) + zero bias, mirroring
    # LinearClassifier.__init__ in eval_linear.py.
    stacked_w = 0.01 * jax.random.normal(kw, (H, C, D), dtype=jnp.float32)
    stacked_b = jnp.zeros((H, C), dtype=jnp.float32)

    model = AllClassifiersPallas(stacked_w, stacked_b, names)
    out = model(x)
    out = {k: jax.block_until_ready(v) for k, v in out.items()}

    ref_f32 = reference_forward(x, stacked_w, stacked_b, names)
    ref_bf16 = reference_forward_bf16(x, stacked_w, stacked_b, names)
    for k in names:
        assert out[k].shape == (B, C)
        # Exact-ish match against the bf16-operand reference.
        assert jnp.allclose(out[k], ref_bf16[k], atol=1e-4, rtol=1e-4)
        # Loose match against the full-precision f32 reference.
        assert jnp.allclose(out[k], ref_f32[k], atol=1e-2, rtol=1e-2)

    print("KERNEL_OK")
</pallas_src>

<mosaic_0001>
module attributes {stable_mosaic.version = 11 : i64} {
  func.func @_single_k_kernel(%arg0: i32, %arg1: i32, %arg2: memref<16x128xbf16, #tpu.memory_space<vmem>>, %arg3: memref<128x256xbf16, #tpu.memory_space<vmem>>, %arg4: memref<1x256xf32, #tpu.memory_space<vmem>>, %arg5: memref<16x256xf32, #tpu.memory_space<vmem>>) attributes {dimension_semantics = [#tpu.dimension_semantics<parallel>, #tpu.dimension_semantics<parallel>], iteration_bounds = array<i64: 1, 1>, scalar_prefetch = 0 : i64, scratch_operands = 0 : i64, tpu.core_type = #tpu.core_type<tc>, window_params = [{transform_indices = @transform_0, window_bounds = array<i64: 16, 128>}, {transform_indices = @transform_1, window_bounds = array<i64: 128, 256>}, {transform_indices = @transform_2, window_bounds = array<i64: 1, 256>}, {transform_indices = @transform_3, window_bounds = array<i64: 16, 256>}]} {
    %c0 = arith.constant 0 : index
    %c0_0 = arith.constant 0 : index
    %0 = vector.load %arg2[%c0, %c0_0] : memref<16x128xbf16, #tpu.memory_space<vmem>>, vector<16x128xbf16>
    %c0_1 = arith.constant 0 : index
    %c0_2 = arith.constant 0 : index
    %1 = vector.load %arg3[%c0_1, %c0_2] : memref<128x256xbf16, #tpu.memory_space<vmem>>, vector<128x256xbf16>
    %cst = arith.constant dense<0.000000e+00> : vector<16x256xf32>
    %2 = tpu.matmul %0, %1, %cst {dimension_numbers = #tpu.dot_dimension_numbers<[1], [0], [0], [1], [0, 0, 1, 1], [], []>} : vector<16x128xbf16>, vector<128x256xbf16>, vector<16x256xf32> -> vector<16x256xf32>
    %c0_3 = arith.constant 0 : index
    %c0_4 = arith.constant 0 : index
    %3 = vector.load %arg4[%c0_3, %c0_4] : memref<1x256xf32, #tpu.memory_space<vmem>>, vector<1x256xf32>
    %4 = vector.broadcast %3 : vector<1x256xf32> to vector<16x256xf32>
    %5 = arith.addf %2, %4 : vector<16x256xf32>
    %c0_5 = arith.constant 0 : index
    %c0_6 = arith.constant 0 : index
    %6 = vector.load %arg5[%c0_5, %c0_6] : memref<16x256xf32, #tpu.memory_space<vmem>>, vector<16x256xf32>
    tpu.vector_store %arg5[%c0_5, %c0_6], %5 {strides = array<i32>} : memref<16x256xf32, #tpu.memory_space<vmem>>, vector<16x256xf32>,
    return
  }
  func.func @transform_0(%arg0: i32, %arg1: i32) -> (i32, i32) {
    %c0_i32 = arith.constant 0 : i32
    %c0_i32_0 = arith.constant 0 : i32
    return %arg0, %c0_i32 : i32, i32
  }
  func.func @transform_1(%arg0: i32, %arg1: i32) -> (i32, i32) {
    %c0_i32 = arith.constant 0 : i32
    %c0_i32_0 = arith.constant 0 : i32
    return %c0_i32, %arg1 : i32, i32
  }
  func.func @transform_2(%arg0: i32, %arg1: i32) -> (i32, i32) {
    %c0_i32 = arith.constant 0 : i32
    %c0_i32_0 = arith.constant 0 : i32
    return %c0_i32, %arg1 : i32, i32
  }
  func.func @transform_3(%arg0: i32, %arg1: i32) -> (i32, i32) {
    %c0_i32 = arith.constant 0 : i32
    return %arg0, %arg1 : i32, i32
  }
}

</mosaic_0001>

<bundles_post_ra>
// kernel: _merged_forward.1
= control target key start
LH: loop header
LB: loop body
LE: loop exit
PB: predicated region body
PF: predicated region fallthrough
CT: control target
= control target key end

     0   :  { %8 = vsyncpa [#allocation3], 0  ;;  %s267_s12 = smov [#allocation2]   ;;  %s321_s0 = inlined_call_operand.vmem [shape: bf16[16,128], index: 0, kind: input, shape index: {}]   ;;  %s322_s1 = inlined_call_operand.hbm [shape: bf16[128,256], index: 1, kind: input, shape index: {}]   ;;  %s323_s2 = inlined_call_operand.vmem [shape: f32[1,256], index: 2, kind: input, shape index: {}]   ;;  %s324_s3 = inlined_call_operand.vmem [shape: f32[16,256], index: 3, kind: output, shape index: {}]  }
   0x1   :  { %s16_s13 = sshll.u32 %s267_s12, 4  ;;  %s243_s16 = scalar_lea.hbm %s322_s1, 2048  ;;  %s17_s13 = int_to_ptr.vmem [resolvable:$true] %s16_s13 }
   0x2   :  { %p244_p0 = scmp.ne.s32.totalorder %s322_s1, %s243_s16  ;;  %p247_p1 = scmp.lt.u32.totalorder %s243_s16, %s322_s1 }
   0x4   :  { %p249_p2 = pnand %p247_p1, %p244_p0 }
   0x6   :  { %252 = shalt.err (!%p249_p2)
}
   0x7   :  { %s253_s21 = scalar_lea.vmem %s17_s13, 2048  ;;  %p258_p4 = scmp.lt.s32.totalorder %s17_s13, %s17_s13 }
   0x8   :  { %p254_p3 = scmp.ne.s32.totalorder %s17_s13, %s253_s21  ;;  %p259_p5 = scmp.lt.s32.totalorder %s253_s21, %s253_s21 }
   0xa   :  { %p260_p6 = por %p259_p5, %p258_p4 }
   0xc   :  { %p261_p7 = pnand %p260_p6, %p254_p3 }
   0xe   :  { %264 = shalt.err (!%p261_p7)
}
   0xf   :  { %s268_s22 = smov 128   ;;  %s269_s23 = smov 8  }
  0x10   :  { %22 = dma.hbm_to_vmem [thread:$0]  %s322_s1, 2048, %s17_s13, [#allocation3], %s268_s22, %s268_s22, %s269_s23  }
  0x11   :  { %265 = dma.done.wait [#allocation3], 2048  }
  0x12   :  { %266 = vsyncadd [#allocation3], 4294965248  ;;  %v270_v0 = vmov 0   ;;  %v218_v1 = vld [vmem:[#allocation2 + $0x4] ss:$8 sps:$4 sm:$0xff]   ;;  %v49_v18 = vlaneseq }
  0x13   :  { %177 = vmatprep.mubr.bf16.mxu0 %v270_v0  ;;  %v220_v2 = vld [vmem:[#allocation2] ss:$8 sps:$4 sm:$0xff]   ;;  %145 = vmatprep.subr.bf16.mxu0 %v218_v1  ;;  %v221_v3 = vld [vmem:[#allocation2 + $0x14] ss:$8 sps:$4 sm:$0xff]   ;;  %v223_v4 = vld [vmem:[#allocation2 + $0x10] ss:$8 sps:$4 sm:$0xff]  }
  0x14   :  { %146 = vmatpush1.bf16.msra.mxu0 %v220_v2  ;;  %v224_v5 = vld [vmem:[#allocation2 + $0x24] ss:$8 sps:$4 sm:$0xff]   ;;  %v226_v6 = vld [vmem:[#allocation2 + $0x20] ss:$8 sps:$4 sm:$0xff]   ;;  %v227_v7 = vld [vmem:[#allocation2 + $0x34] ss:$8 sps:$4 sm:$0xff]  }
  0x15   :  { %147 = vmatprep.subr.bf16.mxu0 %v221_v3  ;;  %v229_v8 = vld [vmem:[#allocation2 + $0x30] ss:$8 sps:$4 sm:$0xff]   ;;  %v230_v9 = vld [vmem:[#allocation2 + $0x44] ss:$8 sps:$4 sm:$0xff]   ;;  %v232_v10 = vld [vmem:[#allocation2 + $0x40] ss:$8 sps:$4 sm:$0xff]  }
  0x16   :  { %v233_v11 = vld [vmem:[#allocation2 + $0x54] ss:$8 sps:$4 sm:$0xff]   ;;  %v235_v12 = vld [vmem:[#allocation2 + $0x50] ss:$8 sps:$4 sm:$0xff]   ;;  %v236_v13 = vld [vmem:[#allocation2 + $0x64] ss:$8 sps:$4 sm:$0xff]  }
  0x17   :  { %v238_v14 = vld [vmem:[#allocation2 + $0x60] ss:$8 sps:$4 sm:$0xff]   ;;  %v239_v15 = vld [vmem:[#allocation2 + $0x74] ss:$8 sps:$4 sm:$0xff]   ;;  %v241_v16 = vld [vmem:[#allocation2 + $0x70] ss:$8 sps:$4 sm:$0xff]  }
  0x18   :  { %148 = vmatpush1.bf16.msra.mxu0 %v223_v4  ;;  %v242_v17 = vld [vmem:[%s321_s0] sm:$0xff]   ;;  %v50_v19 = vshrl.u32 %v49_v18, 7 }
  0x19   :  { %149 = vmatprep.subr.bf16.mxu0 %v224_v5  ;;  %v47_v21 = vld [vmem:[%s323_s2] sm:$0x3] }
  0x1a   :  { %v51_v20 = vsub.s32 0, %v50_v19  ;;  %v55_v22 = vsub.s32 1, %v50_v19 }
  0x1c   :  { %150 = vmatpush1.bf16.msra.mxu0 %v226_v6  ;;  %v52_v23 = vrot.slane %v47_v21, %v51_v20  ;;  %v56_v24 = vrot.slane %v47_v21, %v55_v22 }
  0x1d   :  { %151 = vmatprep.subr.bf16.mxu0 %v227_v7 }
  0x20   :  { %152 = vmatpush1.bf16.msra.mxu0 %v229_v8 }
  0x21   :  { %153 = vmatprep.subr.bf16.mxu0 %v230_v9 }
  0x24   :  { %154 = vmatpush1.bf16.msra.mxu0 %v232_v10 }
  0x25   :  { %155 = vmatprep.subr.bf16.mxu0 %v233_v11 }
  0x28   :  { %156 = vmatpush1.bf16.msra.mxu0 %v235_v12 }
  0x29   :  { %157 = vmatprep.subr.bf16.mxu0 %v236_v13 }
  0x2c   :  { %158 = vmatpush1.bf16.msra.mxu0 %v238_v14 }
  0x2d   :  { %159 = vmatprep.subr.bf16.mxu0 %v239_v15 }
  0x30   :  { %160 = vmatpush1.bf16.msra.mxu0 %v241_v16 }
  0x33   :  { %178 = vmatmul.mubr.bf16.vlgmr.msra.gmra.mrb[0].mxu0 %v242_v17 }
 0x106   :  { %v179_v25 = vpop.f32.mrb[0].mxu0 }
 0x107   :  { %v180_v26 = vadd.f32 %v179_v25, %v52_v23  ;;  %v181_v27 = vpop.f32.mrb[1].mxu0 }
 0x108   :  { %v182_v28 = vadd.f32 %v181_v27, %v56_v24  ;;  %v183_v29 = vpop.f32.mrb[2].mxu0 }
 0x109   :  { %188 = vst [vmem:[%s324_s3] sm:$0xff] %v180_v26  ;;  %v184_v30 = vadd.f32 %v183_v29, %v52_v23  ;;  %v185_v31 = vpop.f32.mrb[3].mxu0 }
 0x10a   :  { %189 = vst [vmem:[%s324_s3 + $0x8] sm:$0xff] %v182_v28  ;;  %v186_v32 = vadd.f32 %v185_v31, %v56_v24 }
 0x10b   :  { %190 = vst [vmem:[%s324_s3 + $0x10] sm:$0xff] %v184_v30 }
 0x10c   :  { %191 = vst [vmem:[%s324_s3 + $0x18] sm:$0xff] %v186_v32 }
 0x10d   :  { %196 = vsyncpa [#allocation3], 1 }

</bundles_post_ra>
